<compile_context>
chip_gen: v7x
topology: tpu7x:2x2x1
jax: 0.10.0
libtpu: 0.0.40
codegen_flags: <defaults>
</compile_context>

<pallas_src>
import math
from functools import partial

import jax
import jax.numpy as jnp
from jax.experimental import pallas as pl
from jax.experimental.pallas import tpu as pltpu

_LANE = 128
_SUBLANE = 8
# Target bytes for one input tile (double-buffering doubles it; the resident
# accumulator adds a little). Stays far below default scoped VMEM limits.
_TILE_BYTES = 2 * 1024 * 1024
_LANE_TARGET = 2048


def _pick_block(n, target, align):
    """Largest divisor of n that is <= target and a multiple of `align`.

    Falls back to the full extent n (always a legal Pallas block shape) when
    no such divisor exists. Returns n whenever n <= target.
    """
    n = int(n)
    target = int(target)
    if n <= target:
        return n
    start = (min(target, n) // align) * align
    for cand in range(start, 0, -align):
        if n % cand == 0:
            return cand
    return n


def _min_identity(dtype):
    dtype = jnp.dtype(dtype)
    if jnp.issubdtype(dtype, jnp.floating):
        return float("-inf")
    if jnp.issubdtype(dtype, jnp.integer):
        return int(jnp.iinfo(dtype).min)
    if dtype == jnp.bool_:
        return False
    raise NotImplementedError(f"max identity for dtype {dtype}")


# ---------------------------------------------------------------------------
# Kernels. The output block is resident across the last ("arbitrary") grid
# axis and a blocked in-kernel max is folded into it each step.
# ---------------------------------------------------------------------------
def _max_lead_kernel(min_val, x_ref, o_ref):
    """Reduce over the sublane axis. x_ref: (td, tb); o_ref: (1, tb)."""
    @pl.when(pl.program_id(1) == 0)
    def _init():
        o_ref[...] = jnp.full_like(o_ref, min_val)

    o_ref[...] = jnp.maximum(o_ref[...],
                             jnp.max(x_ref[...], axis=0, keepdims=True))


def _max_last_kernel(min_val, x_ref, o_ref):
    """Reduce over the lane axis. x_ref: (ta, td); o_ref: (ta, 1)."""
    @pl.when(pl.program_id(1) == 0)
    def _init():
        o_ref[...] = jnp.full_like(o_ref, min_val)

    o_ref[...] = jnp.maximum(o_ref[...],
                             jnp.max(x_ref[...], axis=-1, keepdims=True))


def _max_mid_kernel(min_val, x_ref, o_ref):
    """Reduce over the middle axis. x_ref: (ta, td, tb); o_ref: (ta, 1, tb)."""
    @pl.when(pl.program_id(2) == 0)
    def _init():
        o_ref[...] = jnp.full_like(o_ref, min_val)

    o_ref[...] = jnp.maximum(o_ref[...],
                             jnp.max(x_ref[...], axis=1, keepdims=True))


# ---------------------------------------------------------------------------
# Wrapper
# ---------------------------------------------------------------------------
def pallas_max(x, dim=0):
    """Equivalent of torch.max(x, dim=dim)[0] (values only)."""
    ndim = x.ndim
    if ndim == 0:
        raise ValueError("max(dim=...) requires at least a 1-D input")
    dim = dim % ndim
    shape = x.shape
    a = math.prod(shape[:dim])          # flattened leading (non-reduced)
    d = shape[dim]                      # reduced extent
    b = math.prod(shape[dim + 1:])      # flattened trailing (non-reduced)
    out_dims = shape[:dim] + shape[dim + 1:]

    if d == 0:
        raise ValueError("cannot take max over an empty dimension")
    if a * b == 0:
        return jnp.zeros(out_dims, x.dtype)

    min_val = _min_identity(x.dtype)
    itemsize = jnp.dtype(x.dtype).itemsize
    budget = max(1, _TILE_BYTES // itemsize)    # elements per input tile

    if b == 1:
        # Reduced dim is the (flattened) last axis -> reduce over lanes.
        x2 = x.reshape(a, d)
        td = _pick_block(d, _LANE_TARGET, _LANE)               # lanes
        ta = _pick_block(a, max(1, budget // td), _SUBLANE)    # sublanes
        grid = (a // ta, d // td)
        out = pl.pallas_call(
            partial(_max_last_kernel, min_val),
            out_shape=jax.ShapeDtypeStruct((a, 1), x.dtype),
            grid_spec=pltpu.PrefetchScalarGridSpec(
                num_scalar_prefetch=0,
                grid=grid,
                in_specs=[pl.BlockSpec((ta, td), lambda i, k: (i, k))],
                out_specs=pl.BlockSpec((ta, 1), lambda i, k: (i, 0)),
            ),
            compiler_params=pltpu.CompilerParams(
                dimension_semantics=("parallel", "arbitrary")),
        )(x2)
    elif a == 1:
        # Reduced dim is (effectively) the leading axis: all non-reduced dims
        # flatten into one contiguous, lane-dense slab of width b.
        x2 = x.reshape(d, b)
        tb = _pick_block(b, _LANE_TARGET, _LANE)                       # lanes
        td = _pick_block(d, max(_SUBLANE, budget // tb), _SUBLANE)     # sublanes
        grid = (b // tb, d // td)
        out = pl.pallas_call(
            partial(_max_lead_kernel, min_val),
            out_shape=jax.ShapeDtypeStruct((1, b), x.dtype),
            grid_spec=pltpu.PrefetchScalarGridSpec(
                num_scalar_prefetch=0,
                grid=grid,
                in_specs=[pl.BlockSpec((td, tb), lambda j, k: (k, j))],
                out_specs=pl.BlockSpec((1, tb), lambda j, k: (0, j)),
            ),
            compiler_params=pltpu.CompilerParams(
                dimension_semantics=("parallel", "arbitrary")),
        )(x2)
    else:
        # General middle-dim case: view as (a, d, b), reduce the middle axis.
        x3 = x.reshape(a, d, b)
        tb = _pick_block(b, _LANE_TARGET, _LANE)                       # lanes
        td = _pick_block(d, max(_SUBLANE, budget // tb), _SUBLANE)     # sublanes
        ta = _pick_block(a, max(1, budget // (tb * td)), 1)            # leading
        grid = (a // ta, b // tb, d // td)
        out = pl.pallas_call(
            partial(_max_mid_kernel, min_val),
            out_shape=jax.ShapeDtypeStruct((a, 1, b), x.dtype),
            grid_spec=pltpu.PrefetchScalarGridSpec(
                num_scalar_prefetch=0,
                grid=grid,
                in_specs=[pl.BlockSpec((ta, td, tb),
                                       lambda i, j, k: (i, k, j))],
                out_specs=pl.BlockSpec((ta, 1, tb),
                                       lambda i, j, k: (i, 0, j)),
            ),
            compiler_params=pltpu.CompilerParams(
                dimension_semantics=("parallel", "parallel", "arbitrary")),
        )(x3)

    return out.reshape(out_dims)


class Max:
    """JAX/Pallas port of the PyTorch `Max` module (values of x.max(dim))."""
    # TODO(synk): torch.max(dim) also returns argmax indices; the nn.Module
    # only returns values, so only values are implemented here.

    def __init__(self, dim=0):
        self.dim = dim

    def __call__(self, x):
        return pallas_max(x, self.dim)


if __name__ == "__main__":
    key = jax.random.PRNGKey(0)
    x = jax.random.normal(key, (2, 4, 16, 16), dtype=jnp.float32)

    # Module default: reduce dim 0. The non-reduced dims flatten into one
    # lane-dense 1024-wide slab -> single-pass, transpose-free reduction.
    mod = Max(dim=0)
    y = jax.block_until_ready(mod(x))
    ref = jnp.max(x, axis=0)
    assert y.shape == ref.shape, (y.shape, ref.shape)
    assert jnp.allclose(y, ref), "mismatch vs reference (dim=0)"

    # Also exercise the lane-reduction path (reduce over the last dim).
    y_last = jax.block_until_ready(Max(dim=3)(x))
    ref_last = jnp.max(x, axis=3)
    assert y_last.shape == ref_last.shape, (y_last.shape, ref_last.shape)
    assert jnp.allclose(y_last, ref_last), "mismatch vs reference (dim=3)"

    print("KERNEL_OK")
</pallas_src>

<mosaic_0001>
module attributes {stable_mosaic.version = 11 : i64} {
  func.func @_max_lead_kernel(%arg0: i32, %arg1: i32, %arg2: memref<2x1024xf32, #tpu.memory_space<vmem>>, %arg3: memref<1x1024xf32, #tpu.memory_space<vmem>>) attributes {dimension_semantics = [#tpu.dimension_semantics<parallel>, #tpu.dimension_semantics<arbitrary>], iteration_bounds = array<i64: 1, 1>, scalar_prefetch = 0 : i64, scratch_operands = 0 : i64, tpu.core_type = #tpu.core_type<tc>, window_params = [{transform_indices = @transform_0, window_bounds = array<i64: 2, 1024>}, {transform_indices = @transform_1, window_bounds = array<i64: 1, 1024>}]} {
    %c0_i32 = arith.constant 0 : i32
    %0 = arith.cmpi eq, %arg1, %c0_i32 : i32
    %1 = arith.extui %0 : i1 to i32
    %c0_i32_0 = arith.constant 0 : i32
    %2 = arith.cmpi ne, %1, %c0_i32_0 : i32
    scf.if %2 {
      %cst_6 = arith.constant 0xFF800000 : f32
      %9 = vector.broadcast %cst_6 : f32 to vector<1x1024xf32>
      %c0_7 = arith.constant 0 : index
      %c0_8 = arith.constant 0 : index
      %10 = vector.load %arg3[%c0_7, %c0_8] : memref<1x1024xf32, #tpu.memory_space<vmem>>, vector<1x1024xf32>
      tpu.vector_store %arg3[%c0_7, %c0_8], %9 {strides = array<i32>} : memref<1x1024xf32, #tpu.memory_space<vmem>>, vector<1x1024xf32>,
    } else {
    }
    %c0 = arith.constant 0 : index
    %c0_1 = arith.constant 0 : index
    %3 = vector.load %arg3[%c0, %c0_1] : memref<1x1024xf32, #tpu.memory_space<vmem>>, vector<1x1024xf32>
    %c0_2 = arith.constant 0 : index
    %c0_3 = arith.constant 0 : index
    %4 = vector.load %arg2[%c0_2, %c0_3] : memref<2x1024xf32, #tpu.memory_space<vmem>>, vector<2x1024xf32>
    %cst = arith.constant dense<0xFF800000> : vector<1024xf32>
    %5 = vector.multi_reduction <maximumf>, %4, %cst [0] : vector<2x1024xf32> to vector<1024xf32>
    %6 = vector.shape_cast %5 : vector<1024xf32> to vector<1x1024xf32>
    %7 = arith.maximumf %3, %6 : vector<1x1024xf32>
    %c0_4 = arith.constant 0 : index
    %c0_5 = arith.constant 0 : index
    %8 = vector.load %arg3[%c0_4, %c0_5] : memref<1x1024xf32, #tpu.memory_space<vmem>>, vector<1x1024xf32>
    tpu.vector_store %arg3[%c0_4, %c0_5], %7 {strides = array<i32>} : memref<1x1024xf32, #tpu.memory_space<vmem>>, vector<1x1024xf32>,
    return
  }
  func.func @transform_0(%arg0: i32, %arg1: i32) -> (i32, i32) {
    %c0_i32 = arith.constant 0 : i32
    return %arg1, %arg0 : i32, i32
  }
  func.func @transform_1(%arg0: i32, %arg1: i32) -> (i32, i32) {
    %c0_i32 = arith.constant 0 : i32
    %c0_i32_0 = arith.constant 0 : i32
    return %c0_i32, %arg0 : i32, i32
  }
}

</mosaic_0001>

<bundles_post_ra>
// kernel: tpu_custom_call.1
= control target key start
LH: loop header
LB: loop body
LE: loop exit
PB: predicated region body
PF: predicated region fallthrough
CT: control target
= control target key end

     0   :  { %6 = vsyncpa [#allocation3], 0  ;;  %s314_s0 = inlined_call_operand.hbm [shape: f32[2,1024], index: 0, kind: input, shape index: {}]   ;;  %s315_s1 = inlined_call_operand.hbm [shape: f32[1,1024], index: 1, kind: output, shape index: {}]  }
   0x1   :  { %7 = vsyncpa [#allocation4], 0  ;;  %s260_s6 = smov [#allocation2]   ;;  %s212_s10 = scalar_lea.hbm %s314_s0, 256 }
   0x2   :  { %s14_s7 = sshll.u32 %s260_s6, 4  ;;  %p213_p0 = scmp.ne.s32.totalorder %s314_s0, %s212_s10  ;;  %s15_s7 = int_to_ptr.vmem [resolvable:$true] %s14_s7 }
   0x3   :  { %p216_p1 = scmp.lt.u32.totalorder %s212_s10, %s314_s0 }
   0x5   :  { %p218_p2 = pnand %p216_p1, %p213_p0 }
   0x7   :  { %221 = shalt.err (!%p218_p2)
}
   0x8   :  { %s222_s15 = scalar_lea.vmem %s15_s7, 256  ;;  %p227_p4 = scmp.lt.s32.totalorder %s15_s7, %s15_s7 }
   0x9   :  { %p223_p3 = scmp.ne.s32.totalorder %s15_s7, %s222_s15  ;;  %p228_p5 = scmp.lt.s32.totalorder %s222_s15, %s222_s15 }
   0xb   :  { %p229_p6 = por %p228_p5, %p227_p4 }
   0xd   :  { %p230_p7 = pnand %p229_p6, %p223_p3 }
   0xf   :  { %233 = shalt.err (!%p230_p7)
}
  0x10   :  { %17 = dma.hbm_to_vmem [thread:$0]  %s314_s0, 256, %s15_s7, [#allocation3]  }
  0x11   :  { %256 = dma.done.wait [#allocation3], 256  }
  0x12   :  { %257 = vsyncadd [#allocation3], 4294967040  ;;  %v35_v0 = vlaneseq  ;;  %v261_v1 = vmov 1983009808   ;;  %v262_v5 = vmov 1966171168  }
  0x13   :  { %v33_v2 = vunpack.c.l.s4 %v261_v1  ;;  %v143_v6 = vunpack.c.l.s4 %v262_v5  ;;  %v27_v8 = vld [vmem:[#allocation2] sm:$0xff]  ;;  %v28_v9 = vld [vmem:[#allocation2 + $0x8] sm:$0xff]  ;;  %vm73_vm0 = vcmask 1041408   ;;  %s263_s0 = smov [#allocation5]  }
  0x14   :  { %v36_v3 = vshrl.u32 %v35_v0, 7  ;;  %v31_v11 = vcombine.high %v27_v8, %v27_v8  ;;  %v48_v13 = vcombine.high %v28_v9, %v28_v9  ;;  %s196_s18 = sshll.u32 %s263_s0, 4  ;;  %s197_s18 = int_to_ptr.vmem [resolvable:$true] %s196_s18 }
  0x15   :  { %v34_v4 = vunpack.c.0.s8 %v33_v2  ;;  %v144_v10 = vunpack.c.0.s8 %v143_v6  ;;  %s234_s19 = scalar_lea.vmem %s197_s18, 128  ;;  %p239_p9 = scmp.lt.s32.totalorder %s197_s18, %s197_s18 }
  0x16   :  { %p235_p8 = scmp.ne.s32.totalorder %s197_s18, %s234_s19  ;;  %p240_p10 = scmp.lt.s32.totalorder %s234_s19, %s234_s19 }
  0x17   :  { %v37_v7 = vsub.s32 %v34_v4, %v36_v3  ;;  %v288_v21 = vsub.s32 %v144_v10, %v36_v3 }
  0x18   :  { %p241_p11 = por %p240_p10, %p239_p9 }
  0x19   :  { %v38_v12 = vrot.slane %v27_v8, %v37_v7  ;;  %v55_v14 = vrot.slane %v28_v9, %v37_v7  ;;  %v45_v15 = vrot.slane %v31_v11, %v37_v7  ;;  %v62_v17 = vrot.slane %v48_v13, %v37_v7 }
  0x1a   :  { %p242_p12 = pnand %p241_p11, %p235_p8 }
  0x1b   :  { %v46_v16 = vcombine.high %v38_v12, %v38_v12  ;;  %v63_v18 = vcombine.high %v55_v14, %v55_v14  ;;  %v74_v19 = vsel %vm73_vm0, %v38_v12, -inf  ;;  %v102_v20 = vsel %vm73_vm0, %v55_v14, -inf }
  0x1c   :  { %v47_v22 = vcombine.high %v45_v15, %v45_v15  ;;  %v64_v23 = vcombine.high %v62_v17, %v62_v17  ;;  %v75_v24 = vrot.slane %v74_v19, 4  ;;  %v88_v27 = vsel %vm73_vm0, %v45_v15, -inf }
  0x1d   :  { %v81_v25 = vsel %vm73_vm0, %v46_v16, -inf  ;;  %v103_v28 = vrot.slane %v102_v20, 4  ;;  %v109_v29 = vsel %vm73_vm0, %v63_v18, -inf  ;;  %v89_v31 = vrot.slane %v88_v27, 4 }
  0x1e   :  { %v82_v26 = vrot.slane %v81_v25, 4  ;;  %v76_v30 = vmax.f32 %v74_v19, %v75_v24  ;;  %v95_v32 = vsel %vm73_vm0, %v47_v22, -inf  ;;  %v110_v33 = vrot.slane %v109_v29, 4 }
  0x1f   :  { %v96_v35 = vrot.slane %v95_v32, 4  ;;  %v104_v36 = vmax.f32 %v102_v20, %v103_v28  ;;  %v116_v37 = vsel %vm73_vm0, %v62_v17, -inf  ;;  %v90_v39 = vmax.f32 %v88_v27, %v89_v31 }
  0x20   :  { %v83_v34 = vmax.f32 %v81_v25, %v82_v26  ;;  %v77_v38 = vrot.slane %v76_v30, 2  ;;  %v111_v40 = vmax.f32 %v109_v29, %v110_v33  ;;  %v117_v41 = vrot.slane %v116_v37, 4 }
  0x21   :  { %v97_v43 = vmax.f32 %v95_v32, %v96_v35  ;;  %v105_v44 = vrot.slane %v104_v36, 2  ;;  %v123_v45 = vsel %vm73_vm0, %v64_v23, -inf  ;;  %v91_v47 = vrot.slane %v90_v39, 2 }
  0x22   :  { %v84_v42 = vrot.slane %v83_v34, 2  ;;  %v78_v46 = vmax.f32 %v76_v30, %v77_v38  ;;  %v112_v48 = vrot.slane %v111_v40, 2  ;;  %v118_v49 = vmax.f32 %v116_v37, %v117_v41 }
  0x23   :  { %v98_v51 = vrot.slane %v97_v43, 2  ;;  %v106_v52 = vmax.f32 %v104_v36, %v105_v44  ;;  %v124_v53 = vrot.slane %v123_v45, 4  ;;  %v92_v55 = vmax.f32 %v90_v39, %v91_v47 }
  0x24   :  { %v85_v50 = vmax.f32 %v83_v34, %v84_v42  ;;  %v79_v54 = vrot.slane %v78_v46, 1  ;;  %v113_v56 = vmax.f32 %v111_v40, %v112_v48  ;;  %v119_v57 = vrot.slane %v118_v49, 2 }
  0x25   :  { %v99_v59 = vmax.f32 %v97_v43, %v98_v51  ;;  %v107_v60 = vrot.slane %v106_v52, 1  ;;  %v125_v61 = vmax.f32 %v123_v45, %v124_v53  ;;  %v93_v63 = vrot.slane %v92_v55, 1 }
  0x26   :  { %v86_v58 = vrot.slane %v85_v50, 1  ;;  %v80_v62 = vmax.f32 %v78_v46, %v79_v54  ;;  %v114_v0 = vrot.slane %v113_v56, 1  ;;  %v120_v1 = vmax.f32 %v118_v49, %v119_v57 }
  0x27   :  { %v100_v3 = vrot.slane %v99_v59, 1  ;;  %v108_v4 = vmax.f32 %v106_v52, %v107_v60  ;;  %v126_v5 = vrot.slane %v125_v61, 2  ;;  %v94_v6 = vmax.f32 %v92_v55, %v93_v63 }
  0x28   :  { %v87_v2 = vmax.f32 %v85_v50, %v86_v58  ;;  %v115_v7 = vmax.f32 %v113_v56, %v114_v0  ;;  %v121_v8 = vrot.slane %v120_v1, 1 }
  0x29   :  { %v101_v9 = vmax.f32 %v99_v59, %v100_v3  ;;  %v127_v10 = vmax.f32 %v125_v61, %v126_v5 }
  0x2a   :  { %v138_v11 = vcombine.low %v80_v62, %v87_v2  ;;  %v122_v12 = vmax.f32 %v120_v1, %v121_v8  ;;  %v140_v15 = vcombine.low %v108_v4, %v115_v7 }
  0x2b   :  { %v128_v13 = vrot.slane %v127_v10, 1  ;;  %v139_v14 = vcombine.low %v94_v6, %v101_v9 }
  0x2c   :  { %v148_v16 = vrot.slane %v138_v11, %v288_v21  ;;  %v162_v20 = vrot.slane %v140_v15, %v288_v21 }
  0x2d   :  { %v129_v17 = vmax.f32 %v127_v10, %v128_v13  ;;  %v155_v18 = vrot.slane %v139_v14, %v288_v21 }
  0x2f   :  { %v141_v19 = vcombine.low %v122_v12, %v129_v17  ;;  %v170_v22 = vcombine.low %v148_v16, %v155_v18 }
  0x31   :  { %v169_v23 = vrot.slane %v141_v19, %v288_v21  ;;  %v178_v25 = vrot.slane %v170_v22, %v288_v21 }
  0x33   :  { %v171_v24 = vcombine.low %v162_v20, %v169_v23 }
  0x35   :  { %v185_v26 = vrot.slane %v171_v24, %v288_v21 }
  0x37   :  { %v186_v27 = vcombine.low %v178_v25, %v185_v26 }
  0x39   :  { %189 = vst [vmem:[#allocation5] sm:$0xff] %v186_v27 }
  0x3a   :  { %245 = shalt.err (!%p242_p12)
}
  0x3b   :  { %s246_s22 = scalar_lea.hbm %s315_s1, 128 }
  0x3c   :  { %p247_p13 = scmp.ne.s32.totalorder %s315_s1, %s246_s22  ;;  %p250_p0 = scmp.lt.u32.totalorder %s246_s22, %s315_s1 }
  0x3e   :  { %p252_p1 = pnand %p250_p0, %p247_p13 }
  0x40   :  { %255 = shalt.err (!%p252_p1)
}
  0x41   :  { %199 = dma.vmem_to_hbm [thread:$0]  %s197_s18, 128, %s315_s1, [#allocation4]  }
  0x42   :  { %258 = dma.done.wait [#allocation4], 128  }
  0x43   :  { %259 = vsyncadd [#allocation4], 4294967168 }
  0x44   :  { %203 = vsyncpa [#allocation3], 1 }
  0x45   :  { %204 = vsyncpa [#allocation4], 1 }

</bundles_post_ra>
